<compile_context>
chip_gen: v5e
topology: v5e:2x2
jax: 0.10.0
libtpu: 0.0.40
codegen_flags: <defaults>
</compile_context>

<pallas_src>
import jax
import jax.numpy as jnp
from jax.experimental import pallas as pl
from jax.experimental.pallas import tpu as pltpu

INPUT_SIZE = 10
HIDDEN_SIZE = 5
OUTPUT_SIZE = 1

# Below this batch the fused-XLA expression wins (the custom call is pure
# launch/DMA overhead at ~160 FLOPs/row).
# TODO(synk): re-measure this crossover with the tuned kernel on v5e/v6e/v7x.
_PALLAS_MIN_BATCH = 4096


def _round_up(n, m):
    return ((n + m - 1) // m) * m


def mlp_kernel_t(xt_ref, w1_ref, b1_ref, w2c_ref, b2_ref, ot_ref):
    """Transposed-layout MLP tile.

    xt_ref : (INPUT_SIZE, TB)            batch on lanes (f32 or bf16)
    w1_ref : (HIDDEN_SIZE, INPUT_SIZE)   PyTorch layout, used as-is
    b1_ref : (HIDDEN_SIZE, 1)            f32
    w2c_ref: (HIDDEN_SIZE, OUTPUT_SIZE)  W2 as a column, f32
    b2_ref : (OUTPUT_SIZE, 1)            f32
    ot_ref : (OUTPUT_SIZE, TB)           lane-dense output slab, f32
    """
    # h^T = W1 @ x^T  -> (HIDDEN_SIZE, TB); f32 accumulation on the MXU.
    # TODO(synk): on v7x / bf16-v6e, if bundle dumps show the vector-extended
    # (MXU push) slot binding, move this to the VPU with sublane-broadcast
    # weight rows (W1 is only 5x10).
    h = jnp.dot(w1_ref[...], xt_ref[...], preferred_element_type=jnp.float32)
    h = jnp.maximum(h + b1_ref[...], 0.0)            # bias bcast over lanes + ReLU (VPU)
    # Second layer: (1,5)@(5,TB) would be >99% MXU padding -> VPU multiply +
    # cross-sublane (XLU) reduction; both slots are otherwise idle.
    out = jnp.sum(h * w2c_ref[...], axis=0, keepdims=True) + b2_ref[...]     # (1, TB)
    ot_ref[...] = out.astype(ot_ref.dtype)


def simple_nn_forward_xt(xt, w1, b1, w2, b2, *, tb=131072):
    """Glue-free Pallas path.

    xt : (INPUT_SIZE, Bp) with Bp a multiple of 128, batch on the lane axis.
         dtype float32 or bfloat16 (bf16 halves x HBM traffic; accumulation
         stays f32 -- note bf16 quantizes activations, so expect ~1e-2 error).
    Returns out^T of shape (OUTPUT_SIZE, Bp), float32.  Padded columns contain
    garbage (ReLU(b1)·w2 + b2 or OOB data) and must be sliced off by the caller.
    """
    in_dim, b_pad = xt.shape
    assert in_dim == INPUT_SIZE, f"expected x^T with {INPUT_SIZE} rows, got {in_dim}"
    assert b_pad % 128 == 0, "batch (lane) dim of x^T must be padded to a multiple of 128"

    # Tile selection: multiple of 128 lanes, capped to the batch, and capped so
    # there are >=2 grid steps whenever possible (v7x megacore sharding).
    tb_eff = min(_round_up(max(tb, 128), 128), b_pad)
    if b_pad >= 2 * 128 and -(-b_pad // tb_eff) < 2:
        tb_eff = _round_up(-(-b_pad // 2), 128)
    n_steps = -(-b_pad // tb_eff)          # ragged last tile is allowed
    grid = (n_steps,)

    # Match weight dtype to x for the MXU operand (50 elements -- negligible).
    if xt.dtype == jnp.bfloat16:
        w1 = w1.astype(jnp.bfloat16)
    else:
        w1 = w1.astype(jnp.float32)
    b1c = b1.reshape(HIDDEN_SIZE, 1).astype(jnp.float32)
    w2c = w2.reshape(OUTPUT_SIZE, HIDDEN_SIZE).T.astype(jnp.float32)  # (HIDDEN_SIZE, 1)
    b2c = b2.reshape(OUTPUT_SIZE, 1).astype(jnp.float32)

    # Live VMEM: double-buffered x^T tile (sublanes 10 -> padded 16) +
    # double-buffered out tile (1 -> padded 8) + resident weights (< 1 KiB).
    # Explicit limit: legal on v5e's 16 MiB default scope, <= v7x's 64 MiB.
    x_tile_bytes = 16 * tb_eff * xt.dtype.itemsize
    o_tile_bytes = 8 * tb_eff * 4
    vmem_needed = 2 * (x_tile_bytes + o_tile_bytes) + (1 << 20)
    vmem_limit = int(min(64 << 20, max(vmem_needed, 16 << 20)))

    w_bytes = (w1.size * w1.dtype.itemsize + 4 * (HIDDEN_SIZE + HIDDEN_SIZE + OUTPUT_SIZE))
    cost = pl.CostEstimate(
        flops=2 * b_pad * (INPUT_SIZE * HIDDEN_SIZE + HIDDEN_SIZE * OUTPUT_SIZE),
        transcendentals=0,
        bytes_accessed=xt.size * xt.dtype.itemsize + OUTPUT_SIZE * b_pad * 4 + w_bytes,
    )

    return pl.pallas_call(
        mlp_kernel_t,
        out_shape=jax.ShapeDtypeStruct((OUTPUT_SIZE, b_pad), jnp.float32),
        grid_spec=pltpu.PrefetchScalarGridSpec(
            num_scalar_prefetch=0,
            grid=grid,
            in_specs=[
                # x^T tiles stream along the batch grid (lane axis).
                pl.BlockSpec((INPUT_SIZE, tb_eff), lambda i: (0, i)),
                # Weights / biases: constant index maps -> VMEM-resident, no re-DMA.
                pl.BlockSpec((HIDDEN_SIZE, INPUT_SIZE), lambda i: (0, 0)),
                pl.BlockSpec((HIDDEN_SIZE, 1), lambda i: (0, 0)),
                pl.BlockSpec((HIDDEN_SIZE, OUTPUT_SIZE), lambda i: (0, 0)),
                pl.BlockSpec((OUTPUT_SIZE, 1), lambda i: (0, 0)),
            ],
            out_specs=pl.BlockSpec((OUTPUT_SIZE, tb_eff), lambda i: (0, i)),
        ),
        compiler_params=pltpu.CompilerParams(
            dimension_semantics=("parallel",),   # shard batch grid across v7x's 2 TCs
            vmem_limit_bytes=vmem_limit,
        ),
        cost_estimate=cost,
    )(xt, w1, b1c, w2c, b2c)


def simple_nn_forward(x, w1, b1, w2, b2, *, force_pallas=False, tb=131072):
    """Forward pass of SimpleNN with auto-dispatch.

    Small batches -> fused XLA (the kernel is pure fixed overhead there).
    Large batches -> tiled, transposed-layout Pallas kernel.

    NOTE: the transpose / 128-pad below is layout glue that costs an extra HBM
    pass over x.  In production the producer should emit x^T pre-padded (and
    already bf16 if desired) and call `simple_nn_forward_xt` directly, or the
    transpose should be fused into the pallas_call operand
    (CompilerParams(allow_input_fusion=...)).
    """
    B = x.shape[0]
    if not force_pallas and B < _PALLAS_MIN_BATCH:
        return jnp.maximum(x @ w1.T + b1, 0.0) @ w2.T + b2

    b_pad = _round_up(B, 128)                       # pad to 128 only, not to a tile multiple
    xt = x.T
    if b_pad != B:
        xt = jnp.pad(xt, ((0, 0), (0, b_pad - B)))
    out_t = simple_nn_forward_xt(xt, w1, b1, w2, b2, tb=tb)
    return out_t[:, :B].T                           # (B, OUTPUT_SIZE); drops padded garbage cols


if __name__ == "__main__":
    key = jax.random.PRNGKey(0)
    kx, k1, k2, k3, k4 = jax.random.split(key, 5)

    B = 8
    x = jax.random.normal(kx, (B, INPUT_SIZE), dtype=jnp.float32)

    # Deterministic params mimicking nn.Linear's U(-1/sqrt(fan_in), 1/sqrt(fan_in)).
    bound1 = 1.0 / jnp.sqrt(INPUT_SIZE)
    w1 = jax.random.uniform(k1, (HIDDEN_SIZE, INPUT_SIZE), jnp.float32, -bound1, bound1)
    b1 = jax.random.uniform(k2, (HIDDEN_SIZE,), jnp.float32, -bound1, bound1)
    bound2 = 1.0 / jnp.sqrt(HIDDEN_SIZE)
    w2 = jax.random.uniform(k3, (OUTPUT_SIZE, HIDDEN_SIZE), jnp.float32, -bound2, bound2)
    b2 = jax.random.uniform(k4, (OUTPUT_SIZE,), jnp.float32, -bound2, bound2)

    # Reference forward pass in plain JAX.
    ref = jnp.maximum(x @ w1.T + b1, 0.0) @ w2.T + b2

    # Exercise the Pallas kernel (force past the small-batch XLA fast path).
    out = jax.block_until_ready(simple_nn_forward(x, w1, b1, w2, b2, force_pallas=True))
    assert out.shape == (B, OUTPUT_SIZE)
    assert jnp.allclose(out, ref, atol=1e-5, rtol=1e-5)

    # Glue-free transposed entry point (what a fused producer should feed).
    b_pad = _round_up(B, 128)
    xt = jnp.pad(x.T, ((0, 0), (0, b_pad - B)))
    out_t = jax.block_until_ready(simple_nn_forward_xt(xt, w1, b1, w2, b2))
    assert jnp.allclose(out_t[:, :B].T, ref, atol=1e-5, rtol=1e-5)

    # Auto-dispatch path (small B -> fused XLA) must agree as well.
    out_auto = jax.block_until_ready(simple_nn_forward(x, w1, b1, w2, b2))
    assert jnp.allclose(out_auto, ref, atol=1e-5, rtol=1e-5)

    print("KERNEL_OK")
</pallas_src>

<mosaic_0001>
module attributes {stable_mosaic.version = 11 : i64} {
  func.func @mlp_kernel_t(%arg0: i32, %arg1: memref<10x128xf32, #tpu.memory_space<vmem>>, %arg2: memref<5x10xf32, #tpu.memory_space<vmem>>, %arg3: memref<5x1xf32, #tpu.memory_space<vmem>>, %arg4: memref<5x1xf32, #tpu.memory_space<vmem>>, %arg5: memref<1x1xf32, #tpu.memory_space<vmem>>, %arg6: memref<1x128xf32, #tpu.memory_space<vmem>>) attributes {dimension_semantics = [#tpu.dimension_semantics<parallel>], iteration_bounds = array<i64: 1>, scalar_prefetch = 0 : i64, scratch_operands = 0 : i64, tpu.core_type = #tpu.core_type<tc>, window_params = [{transform_indices = @transform_0, window_bounds = array<i64: 10, 128>}, {pipeline_mode = #tpu.pipeline_mode<synchronous>, transform_indices = @transform_1, window_bounds = array<i64: 5, 10>}, {pipeline_mode = #tpu.pipeline_mode<synchronous>, transform_indices = @transform_2, window_bounds = array<i64: 5, 1>}, {pipeline_mode = #tpu.pipeline_mode<synchronous>, transform_indices = @transform_3, window_bounds = array<i64: 5, 1>}, {pipeline_mode = #tpu.pipeline_mode<synchronous>, transform_indices = @transform_4, window_bounds = array<i64: 1, 1>}, {transform_indices = @transform_5, window_bounds = array<i64: 1, 128>}]} {
    %c0 = arith.constant 0 : index
    %c0_0 = arith.constant 0 : index
    %0 = vector.load %arg2[%c0, %c0_0] : memref<5x10xf32, #tpu.memory_space<vmem>>, vector<5x10xf32>
    %c0_1 = arith.constant 0 : index
    %c0_2 = arith.constant 0 : index
    %1 = vector.load %arg1[%c0_1, %c0_2] : memref<10x128xf32, #tpu.memory_space<vmem>>, vector<10x128xf32>
    %cst = arith.constant dense<0.000000e+00> : vector<5x128xf32>
    %2 = tpu.matmul %0, %1, %cst {dimension_numbers = #tpu.dot_dimension_numbers<[1], [0], [0], [1], [0, 0, 1, 1], [], []>} : vector<5x10xf32>, vector<10x128xf32>, vector<5x128xf32> -> vector<5x128xf32>
    %c0_3 = arith.constant 0 : index
    %c0_4 = arith.constant 0 : index
    %3 = vector.load %arg3[%c0_3, %c0_4] : memref<5x1xf32, #tpu.memory_space<vmem>>, vector<5x1xf32>
    %4 = vector.broadcast %3 : vector<5x1xf32> to vector<5x128xf32>
    %5 = arith.addf %2, %4 : vector<5x128xf32>
    %cst_5 = arith.constant 0.000000e+00 : f32
    %6 = vector.broadcast %cst_5 : f32 to vector<5x128xf32>
    %7 = arith.maximumf %5, %6 : vector<5x128xf32>
    %c0_6 = arith.constant 0 : index
    %c0_7 = arith.constant 0 : index
    %8 = vector.load %arg4[%c0_6, %c0_7] : memref<5x1xf32, #tpu.memory_space<vmem>>, vector<5x1xf32>
    %9 = vector.broadcast %8 : vector<5x1xf32> to vector<5x128xf32>
    %10 = arith.mulf %7, %9 : vector<5x128xf32>
    %cst_8 = arith.constant dense<0.000000e+00> : vector<128xf32>
    %11 = vector.multi_reduction <add>, %10, %cst_8 [0] : vector<5x128xf32> to vector<128xf32>
    %12 = vector.shape_cast %11 : vector<128xf32> to vector<1x128xf32>
    %c0_9 = arith.constant 0 : index
    %c0_10 = arith.constant 0 : index
    %13 = vector.load %arg5[%c0_9, %c0_10] : memref<1x1xf32, #tpu.memory_space<vmem>>, vector<1x1xf32>
    %14 = vector.broadcast %13 : vector<1x1xf32> to vector<1x128xf32>
    %15 = arith.addf %12, %14 : vector<1x128xf32>
    %c0_11 = arith.constant 0 : index
    %c0_12 = arith.constant 0 : index
    %16 = vector.load %arg6[%c0_11, %c0_12] : memref<1x128xf32, #tpu.memory_space<vmem>>, vector<1x128xf32>
    tpu.vector_store %arg6[%c0_11, %c0_12], %15 {strides = array<i32>} : memref<1x128xf32, #tpu.memory_space<vmem>>, vector<1x128xf32>,
    return
  }
  func.func @transform_0(%arg0: i32) -> (i32, i32) {
    %c0_i32 = arith.constant 0 : i32
    %c0_i32_0 = arith.constant 0 : i32
    return %c0_i32, %arg0 : i32, i32
  }
  func.func @transform_1(%arg0: i32) -> (i32, i32) {
    %c0_i32 = arith.constant 0 : i32
    %c0_i32_0 = arith.constant 0 : i32
    %c0_i32_1 = arith.constant 0 : i32
    return %c0_i32, %c0_i32_0 : i32, i32
  }
  func.func @transform_2(%arg0: i32) -> (i32, i32) {
    %c0_i32 = arith.constant 0 : i32
    %c0_i32_0 = arith.constant 0 : i32
    %c0_i32_1 = arith.constant 0 : i32
    return %c0_i32, %c0_i32_0 : i32, i32
  }
  func.func @transform_3(%arg0: i32) -> (i32, i32) {
    %c0_i32 = arith.constant 0 : i32
    %c0_i32_0 = arith.constant 0 : i32
    %c0_i32_1 = arith.constant 0 : i32
    return %c0_i32, %c0_i32_0 : i32, i32
  }
  func.func @transform_4(%arg0: i32) -> (i32, i32) {
    %c0_i32 = arith.constant 0 : i32
    %c0_i32_0 = arith.constant 0 : i32
    %c0_i32_1 = arith.constant 0 : i32
    return %c0_i32, %c0_i32_0 : i32, i32
  }
  func.func @transform_5(%arg0: i32) -> (i32, i32) {
    %c0_i32 = arith.constant 0 : i32
    %c0_i32_0 = arith.constant 0 : i32
    return %c0_i32, %arg0 : i32, i32
  }
}

</mosaic_0001>

<bundles_post_ra>
// kernel: tpu_custom_call.1
= control target key start
LH: loop header
LB: loop body
LE: loop exit
PB: predicated region body
PF: predicated region fallthrough
CT: control target
= control target key end

     0   :  { %s229_s0 = inlined_call_operand.vmem [shape: f32[10,128], index: 0, kind: input, shape index: {}]   ;;  %s230_s1 = inlined_call_operand.hbm [shape: f32[5,10], index: 1, kind: input, shape index: {}]   ;;  %s231_s2 = inlined_call_operand.vmem [shape: f32[5,1], index: 2, kind: input, shape index: {}]   ;;  %s232_s3 = inlined_call_operand.vmem [shape: f32[5,1], index: 3, kind: input, shape index: {}]   ;;  %s233_s4 = inlined_call_operand.<no memory space> [shape: f32[1,1], index: 4, kind: input, shape index: {}]   ;;  %s234_s5 = inlined_call_operand.hbm [shape: f32[1,128], index: 5, kind: output, shape index: {}]  }
   0x1   :  { %v10_v0 = vstv %s233_s4 }
   0x2   :  { %11 = vst [vmem:[#allocation2] sm:$0x1] %v10_v0 }
   0x3   :  { %12 = vsyncpa [#allocation4], 0 }
   0x4   :  { %13 = vsyncpa [#allocation5], 0  ;;  %s21_s22 = sshll.u32 %s230_s1, 4  ;;  %s175_s23 = smov [#allocation3]   ;;  %s22_s22 = int_to_ptr.hbm [resolvable:$true] %s21_s22 }
   0x5   :  { %s23_s24 = sshll.u32 %s175_s23, 4  ;;  %s24_s24 = int_to_ptr.vmem [resolvable:$true] %s23_s24 }
   0x6   :  { %26 = dma.hbm_to_vmem [thread:$0]  %s22_s22, 128, %s24_s24, [#allocation4]  }
   0x7   :  { %171 = dma.done.wait [#allocation4], 128  }
   0x8   :  { %172 = vsyncadd [#allocation4], 4294967168  ;;  %v176_v1 = vmov 0   ;;  %vm50_vm0 = vcmask 1041408   ;;  %v39_v2 = vld [vmem:[%s229_s0 + $0x8] sm:$0x3] }
   0x9   :  { %121 = vset.pattern.permute.xlu0 %v176_v1  ;;  %122 = vset.pattern.permute.xlu1 %v176_v1  ;;  %v40_v3 = vld [vmem:[%s231_s2] sm:$0x1f]  ;;  %vm46_vm1 = vcmask 80896   ;;  %vm82_vm2 = vcmask 1044480   ;;  %s106_s7 = sshll.u32 %s234_s5, 4  ;;  %s107_s7 = int_to_ptr.hbm [resolvable:$true] %s106_s7 }
   0xa   :  { %v38_v4 = vld [vmem:[%s229_s0] sm:$0xff]  ;;  %116 = vmatpush.msk.msra.mxu0 %vm50_vm0, %v39_v2  ;;  %43 = vperm.xlu0 %121, %v40_v3   ;;  %s177_s0 = smov [#allocation6]  }
   0xb   :  { %v37_v5 = vld [vmem:[#allocation3] sm:$0x1f]  ;;  %v90_v6 = vld [vmem:[#allocation2] sm:$0x1]  ;;  %s104_s2 = sshll.u32 %s177_s0, 4  ;;  %s105_s2 = int_to_ptr.vmem [resolvable:$true] %s104_s2 }
   0xc   :  { %93 = vperm.xlu1 %122, %v90_v6   ;;  %69 = vmatpush.msra.mxu0 %v38_v4  ;;  %v75_v7 = vld [vmem:[%s232_s3] sm:$0x1f] }
   0xd   :  { %117 = vmatmul.msk.f32.vlgmr.msra.gmra.mxu0 %vm46_vm1, %v37_v5 }
  0x12   :  { %78 = vperm.xlu0 %121, %v75_v7  }
  0x7c   :  { %v44_v8 = vpop.permute.xlu0 %43 }
  0x7e   :  { %v94_v18 = vpop.permute.xlu1 %93 }
  0x7f   :  { %v96_v21 = vperm.slane %v94_v18, 0 }
  0x84   :  { %v79_v12 = vpop.permute.xlu0 %78 }
  0x8a   :  { %v71_v9 = vpop.f32.mrf.mxu0 }
  0x8b   :  { %v72_v10 = vadd.f32 %v71_v9, %v44_v8 }
  0x8d   :  { %v74_v11 = vmax.f32 %v72_v10, 0.0 }
  0x8f   :  { %v81_v13 = vmul.f32 %v79_v12, %v74_v11 }
  0x91   :  { %v83_v14 = vsel %vm82_vm2, %v81_v13, 0.0 }
  0x92   :  { %v84_v15 = vrot.slane %v83_v14, 4 }
  0x94   :  { %v85_v16 = vadd.f32 %v84_v15, %v83_v14 }
  0x96   :  { %v86_v17 = vrot.slane %v85_v16, 2 }
  0x98   :  { %v87_v19 = vadd.f32 %v86_v17, %v85_v16 }
  0x9a   :  { %v88_v20 = vrot.slane %v87_v19, 1 }
  0x9c   :  { %v89_v22 = vadd.f32 %v88_v20, %v87_v19 }
  0x9e   :  { %v97_v23 = vadd.f32 %v96_v21, %v89_v22 }
  0xa0   :  { %98 = vst [vmem:[#allocation6] sm:$0x1] %v97_v23 }
  0xa1   :  { %109 = dma.vmem_to_hbm [thread:$0]  %s105_s2, 16, %s107_s7, [#allocation5]  }
  0xa2   :  { %173 = dma.done.wait [#allocation5], 16  }
  0xa3   :  { %174 = vsyncadd [#allocation5], 4294967280 }
  0xa4   :  { %114 = vsyncpa [#allocation4], 1 }
  0xa5   :  { %115 = vsyncpa [#allocation5], 1 }

</bundles_post_ra>
